<compile_context>
chip_gen: v7x
topology: tpu7x:2x2x1
jax: 0.10.0
libtpu: 0.0.40
codegen_flags: <defaults>
</compile_context>

<pallas_src>
import jax
import jax.numpy as jnp
from jax.experimental import pallas as pl
from jax.experimental.pallas import tpu as pltpu


def _round_up(n, m):
    return ((n + m - 1) // m) * m


def _leaky_relu(h, slope=0.2):
    # maximum(h, slope*h) == LeakyReLU for slope in (0, 1); single vmax on the VPU.
    return jnp.maximum(h, slope * h)


def lmapping_kernel(x_ref, z_ref, w1_ref, w2_ref, w3_ref, wz3_ref, w4_ref, w5_ref, o_ref):
    """One batch tile of the fused MLP (+ folded Sub_Adder). Weights are VMEM-resident full blocks."""
    cdt = w1_ref.dtype  # MXU input dtype (bf16); accumulation is always f32.

    x = x_ref[...].astype(cdt)  # in-kernel cast: free VPU work under MXU/DMA slack
    h = _leaky_relu(jnp.dot(x, w1_ref[...], preferred_element_type=jnp.float32)).astype(cdt)
    h = _leaky_relu(jnp.dot(h, w2_ref[...], preferred_element_type=jnp.float32)).astype(cdt)

    # Sub_Adder folded into layer 3: (h + z@Wz) @ W3 == h@W3 + z@(Wz@W3); both sums land in the
    # f32 MXU accumulator. wz3 = Wz@W3 is precomputed once in prepare_params().
    z = z_ref[...].astype(cdt)  # one-hot subtype code in SmileGAN -> exact in bf16
    h3 = (jnp.dot(h, w3_ref[...], preferred_element_type=jnp.float32)
          + jnp.dot(z, wz3_ref[...], preferred_element_type=jnp.float32))
    h = _leaky_relu(h3).astype(cdt)

    h = _leaky_relu(jnp.dot(h, w4_ref[...], preferred_element_type=jnp.float32)).astype(cdt)
    # Final layer: W5 pre-padded so the output last dim is a 128-multiple (lane-dense vst);
    # output stored bf16 to halve writeback bytes.
    o_ref[...] = jnp.dot(h, w5_ref[...], preferred_element_type=jnp.float32).astype(o_ref.dtype)


def init_params(key, n_roi, n_cluster):
    """Deterministic PyTorch-style init. Weights stored PyTorch-layout (out, in), f32."""
    dims = [
        (n_roi // 2, n_roi),        # W1
        (n_roi // 4, n_roi // 2),   # W2
        (n_roi // 4, n_cluster),    # Wz  (Sub_Adder linear)
        (n_roi // 2, n_roi // 4),   # W3
        (n_roi, n_roi // 2),        # W4
        (n_roi, n_roi),             # W5
    ]
    keys = jax.random.split(key, len(dims))
    params = []
    for k, (out_d, in_d) in zip(keys, dims):
        bound = 1.0 / jnp.sqrt(jnp.float32(in_d))
        params.append(jax.random.uniform(k, (out_d, in_d), jnp.float32, -bound, bound))
    return params


def prepare_params(params, compute_dtype=jnp.bfloat16, lane_multiple=128):
    """One-time weight prep (hoisted out of the hot path): transpose to (in, out), cast to bf16,
    fold the Sub_Adder weight through W3, and zero-pad W5's output columns to a 128 multiple."""
    w1, w2, wz, w3, w4, w5 = params
    n_roi = w5.shape[0]
    rp = _round_up(n_roi, lane_multiple)

    w5t = w5.T.astype(jnp.float32)
    if rp != n_roi:  # only pad when needed (lane-dense output stores)
        w5t = jnp.pad(w5t, ((0, 0), (0, rp - n_roi)))
    w5t = w5t.astype(compute_dtype)

    # Sub_Adder fold: (h + z @ Wz^T) @ W3^T == h @ W3^T + z @ (Wz^T @ W3^T). Computed once in f32.
    wz3 = (wz.T.astype(jnp.float32) @ w3.T.astype(jnp.float32)).astype(compute_dtype)  # (K, R/2)

    return (
        w1.T.astype(compute_dtype),   # (R,   R/2)
        w2.T.astype(compute_dtype),   # (R/2, R/4)
        w3.T.astype(compute_dtype),   # (R/4, R/2)
        wz3,                          # (K,   R/2)
        w4.T.astype(compute_dtype),   # (R/2, R)
        w5t,                          # (R,   Rp)
    )


def lmapping_generator(x, z, prepared, *, block_b=2048, row_align=256, out_dtype=jnp.float32):
    """Batch-tiled fused forward. `prepared` comes from prepare_params() (weights preprocessed once).

    x: (B, nROI) float32, z: (B, nCluster) float32 (one-hot subtype code). Returns (B, nROI)."""
    w1t, w2t, w3t, wz3, w4t, w5t = prepared
    b, n_roi = x.shape
    n_cluster = z.shape[1]
    r2, r4 = w1t.shape[1], w2t.shape[1]
    rp = w5t.shape[1]

    # Batch tile: row_align-aligned, capped so there are >=2 grid steps whenever B allows it
    # (megacore sharding on v7x). No jnp.pad: the trailing block overhangs; all ops are row-wise,
    # OOB output writes are masked by Pallas and garbage input rows only yield discarded rows.
    tb = min(_round_up(block_b, row_align), _round_up(pl.cdiv(b, 2), row_align))
    grid = (pl.cdiv(b, tb),)

    act_spec = lambda cols: pl.BlockSpec((tb, cols), lambda i: (i, 0))
    # Constant index_map => each weight is DMA'd once and stays resident in VMEM across the grid.
    w_spec = lambda w: pl.BlockSpec(w.shape, lambda i: (0, 0))

    flops = 2 * b * (n_roi * r2 + r2 * r4 + r4 * r2 + n_cluster * r2 + r2 * n_roi + n_roi * rp)
    bytes_accessed = (
        x.size * x.dtype.itemsize
        + z.size * z.dtype.itemsize
        + b * rp * 2                                              # bf16 writeback
        + sum(w.size * w.dtype.itemsize for w in prepared)
    )

    out = pl.pallas_call(
        lmapping_kernel,
        out_shape=jax.ShapeDtypeStruct((b, rp), jnp.bfloat16),
        grid=grid,
        in_specs=[
            act_spec(n_roi), act_spec(n_cluster),
            w_spec(w1t), w_spec(w2t), w_spec(w3t), w_spec(wz3), w_spec(w4t), w_spec(w5t),
        ],
        out_specs=act_spec(rp),
        compiler_params=pltpu.CompilerParams(dimension_semantics=("parallel",)),
        cost_estimate=pl.CostEstimate(
            flops=flops, transcendentals=0, bytes_accessed=bytes_accessed),
    )(x, z, w1t, w2t, w3t, wz3, w4t, w5t)

    if rp != n_roi:
        out = out[:, :n_roi]          # strip lane padding (fuses with downstream consumers)
    return out.astype(out_dtype)


def lmapping_generator_ref(x, z, params, compute_dtype=jnp.bfloat16):
    """Pure-JAX reference mirroring the kernel's dtype strategy (bf16 MXU inputs, f32 accumulation)
    but with the *unfolded* Sub_Adder, so the wz3 fold is actually validated."""
    w1, w2, wz, w3, w4, w5 = params
    cd = compute_dtype
    h = _leaky_relu(jnp.dot(x.astype(cd), w1.T.astype(cd),
                            preferred_element_type=jnp.float32)).astype(cd)
    h = _leaky_relu(jnp.dot(h, w2.T.astype(cd), preferred_element_type=jnp.float32))
    h = h + jnp.dot(z.astype(jnp.float32), wz.T.astype(jnp.float32))
    h = h.astype(cd)
    h = _leaky_relu(jnp.dot(h, w3.T.astype(cd), preferred_element_type=jnp.float32)).astype(cd)
    h = _leaky_relu(jnp.dot(h, w4.T.astype(cd), preferred_element_type=jnp.float32)).astype(cd)
    return jnp.dot(h, w5.T.astype(cd), preferred_element_type=jnp.float32)


if __name__ == "__main__":
    B, N_ROI, N_CLUSTER = 200, 64, 4   # B deliberately not a tile multiple: exercises the
                                       # overhanging (masked) trailing block, no padding copies.

    key = jax.random.PRNGKey(0)
    kx, kz, kp = jax.random.split(key, 3)

    x = jax.random.normal(kx, (B, N_ROI), jnp.float32)
    # z is a one-hot subtype assignment in SmileGAN; build it deterministically.
    z_idx = jax.random.randint(kz, (B,), 0, N_CLUSTER)
    z = jax.nn.one_hot(z_idx, N_CLUSTER, dtype=jnp.float32)

    params = init_params(kp, N_ROI, N_CLUSTER)
    prepared = prepare_params(params)   # one-time: transpose + bf16 + Wz@W3 fold + lane padding

    ref = lmapping_generator_ref(x, z, params)

    # 1) Default config: tb=256 > B -> single, partially-valid block (OOB output rows masked).
    out1 = jax.block_until_ready(lmapping_generator(x, z, prepared))
    assert out1.shape == (B, N_ROI)
    assert jnp.allclose(out1, ref, atol=2e-2, rtol=2e-2), float(jnp.max(jnp.abs(out1 - ref)))

    # 2) Small tiles: grid=(4,), last block only partially valid -> exercises multi-step pipeline.
    out2 = jax.block_until_ready(lmapping_generator(x, z, prepared, block_b=64, row_align=64))
    assert out2.shape == (B, N_ROI)
    assert jnp.allclose(out2, ref, atol=2e-2, rtol=2e-2), float(jnp.max(jnp.abs(out2 - ref)))

    print("KERNEL_OK")
</pallas_src>

<mosaic_0001>
module attributes {stable_mosaic.version = 11 : i64} {
  func.func @lmapping_kernel(%arg0: i32, %arg1: memref<256x64xf32, #tpu.memory_space<vmem>>, %arg2: memref<256x4xf32, #tpu.memory_space<vmem>>, %arg3: memref<64x32xbf16, #tpu.memory_space<vmem>>, %arg4: memref<32x16xbf16, #tpu.memory_space<vmem>>, %arg5: memref<16x32xbf16, #tpu.memory_space<vmem>>, %arg6: memref<4x32xbf16, #tpu.memory_space<vmem>>, %arg7: memref<32x64xbf16, #tpu.memory_space<vmem>>, %arg8: memref<64x128xbf16, #tpu.memory_space<vmem>>, %arg9: memref<256x128xbf16, #tpu.memory_space<vmem>>) attributes {dimension_semantics = [#tpu.dimension_semantics<parallel>], iteration_bounds = array<i64: 1>, scalar_prefetch = 0 : i64, scratch_operands = 0 : i64, tpu.core_type = #tpu.core_type<tc>, window_params = [{transform_indices = @transform_0, window_bounds = array<i64: 256, 64>}, {transform_indices = @transform_1, window_bounds = array<i64: 256, 4>}, {pipeline_mode = #tpu.pipeline_mode<synchronous>, transform_indices = @transform_2, window_bounds = array<i64: 64, 32>}, {pipeline_mode = #tpu.pipeline_mode<synchronous>, transform_indices = @transform_3, window_bounds = array<i64: 32, 16>}, {pipeline_mode = #tpu.pipeline_mode<synchronous>, transform_indices = @transform_4, window_bounds = array<i64: 16, 32>}, {pipeline_mode = #tpu.pipeline_mode<synchronous>, transform_indices = @transform_5, window_bounds = array<i64: 4, 32>}, {pipeline_mode = #tpu.pipeline_mode<synchronous>, transform_indices = @transform_6, window_bounds = array<i64: 32, 64>}, {pipeline_mode = #tpu.pipeline_mode<synchronous>, transform_indices = @transform_7, window_bounds = array<i64: 64, 128>}, {transform_indices = @transform_8, window_bounds = array<i64: 256, 128>}]} {
    %c0 = arith.constant 0 : index
    %c0_0 = arith.constant 0 : index
    %0 = vector.load %arg1[%c0, %c0_0] : memref<256x64xf32, #tpu.memory_space<vmem>>, vector<256x64xf32>
    %1 = arith.truncf %0 : vector<256x64xf32> to vector<256x64xbf16>
    %c0_1 = arith.constant 0 : index
    %c0_2 = arith.constant 0 : index
    %2 = vector.load %arg3[%c0_1, %c0_2] : memref<64x32xbf16, #tpu.memory_space<vmem>>, vector<64x32xbf16>
    %cst = arith.constant dense<0.000000e+00> : vector<256x32xf32>
    %3 = tpu.matmul %1, %2, %cst {dimension_numbers = #tpu.dot_dimension_numbers<[1], [0], [0], [1], [0, 0, 1, 1], [], []>} : vector<256x64xbf16>, vector<64x32xbf16>, vector<256x32xf32> -> vector<256x32xf32>
    %cst_3 = arith.constant 2.000000e-01 : f32
    %4 = vector.broadcast %cst_3 : f32 to vector<256x32xf32>
    %5 = arith.mulf %4, %3 : vector<256x32xf32>
    %6 = arith.maximumf %3, %5 : vector<256x32xf32>
    %7 = arith.truncf %6 : vector<256x32xf32> to vector<256x32xbf16>
    %c0_4 = arith.constant 0 : index
    %c0_5 = arith.constant 0 : index
    %8 = vector.load %arg4[%c0_4, %c0_5] : memref<32x16xbf16, #tpu.memory_space<vmem>>, vector<32x16xbf16>
    %cst_6 = arith.constant dense<0.000000e+00> : vector<256x16xf32>
    %9 = tpu.matmul %7, %8, %cst_6 {dimension_numbers = #tpu.dot_dimension_numbers<[1], [0], [0], [1], [0, 0, 1, 1], [], []>} : vector<256x32xbf16>, vector<32x16xbf16>, vector<256x16xf32> -> vector<256x16xf32>
    %cst_7 = arith.constant 2.000000e-01 : f32
    %10 = vector.broadcast %cst_7 : f32 to vector<256x16xf32>
    %11 = arith.mulf %10, %9 : vector<256x16xf32>
    %12 = arith.maximumf %9, %11 : vector<256x16xf32>
    %13 = arith.truncf %12 : vector<256x16xf32> to vector<256x16xbf16>
    %c0_8 = arith.constant 0 : index
    %c0_9 = arith.constant 0 : index
    %14 = vector.load %arg2[%c0_8, %c0_9] : memref<256x4xf32, #tpu.memory_space<vmem>>, vector<256x4xf32>
    %15 = arith.truncf %14 : vector<256x4xf32> to vector<256x4xbf16>
    %c0_10 = arith.constant 0 : index
    %c0_11 = arith.constant 0 : index
    %16 = vector.load %arg5[%c0_10, %c0_11] : memref<16x32xbf16, #tpu.memory_space<vmem>>, vector<16x32xbf16>
    %cst_12 = arith.constant dense<0.000000e+00> : vector<256x32xf32>
    %17 = tpu.matmul %13, %16, %cst_12 {dimension_numbers = #tpu.dot_dimension_numbers<[1], [0], [0], [1], [0, 0, 1, 1], [], []>} : vector<256x16xbf16>, vector<16x32xbf16>, vector<256x32xf32> -> vector<256x32xf32>
    %c0_13 = arith.constant 0 : index
    %c0_14 = arith.constant 0 : index
    %18 = vector.load %arg6[%c0_13, %c0_14] : memref<4x32xbf16, #tpu.memory_space<vmem>>, vector<4x32xbf16>
    %cst_15 = arith.constant dense<0.000000e+00> : vector<256x32xf32>
    %19 = tpu.matmul %15, %18, %cst_15 {dimension_numbers = #tpu.dot_dimension_numbers<[1], [0], [0], [1], [0, 0, 1, 1], [], []>} : vector<256x4xbf16>, vector<4x32xbf16>, vector<256x32xf32> -> vector<256x32xf32>
    %20 = arith.addf %17, %19 : vector<256x32xf32>
    %cst_16 = arith.constant 2.000000e-01 : f32
    %21 = vector.broadcast %cst_16 : f32 to vector<256x32xf32>
    %22 = arith.mulf %21, %20 : vector<256x32xf32>
    %23 = arith.maximumf %20, %22 : vector<256x32xf32>
    %24 = arith.truncf %23 : vector<256x32xf32> to vector<256x32xbf16>
    %c0_17 = arith.constant 0 : index
    %c0_18 = arith.constant 0 : index
    %25 = vector.load %arg7[%c0_17, %c0_18] : memref<32x64xbf16, #tpu.memory_space<vmem>>, vector<32x64xbf16>
    %cst_19 = arith.constant dense<0.000000e+00> : vector<256x64xf32>
    %26 = tpu.matmul %24, %25, %cst_19 {dimension_numbers = #tpu.dot_dimension_numbers<[1], [0], [0], [1], [0, 0, 1, 1], [], []>} : vector<256x32xbf16>, vector<32x64xbf16>, vector<256x64xf32> -> vector<256x64xf32>
    %cst_20 = arith.constant 2.000000e-01 : f32
    %27 = vector.broadcast %cst_20 : f32 to vector<256x64xf32>
    %28 = arith.mulf %27, %26 : vector<256x64xf32>
    %29 = arith.maximumf %26, %28 : vector<256x64xf32>
    %30 = arith.truncf %29 : vector<256x64xf32> to vector<256x64xbf16>
    %c0_21 = arith.constant 0 : index
    %c0_22 = arith.constant 0 : index
    %31 = vector.load %arg8[%c0_21, %c0_22] : memref<64x128xbf16, #tpu.memory_space<vmem>>, vector<64x128xbf16>
    %cst_23 = arith.constant dense<0.000000e+00> : vector<256x128xf32>
    %32 = tpu.matmul %30, %31, %cst_23 {dimension_numbers = #tpu.dot_dimension_numbers<[1], [0], [0], [1], [0, 0, 1, 1], [], []>} : vector<256x64xbf16>, vector<64x128xbf16>, vector<256x128xf32> -> vector<256x128xf32>
    %33 = arith.truncf %32 : vector<256x128xf32> to vector<256x128xbf16>
    %c0_24 = arith.constant 0 : index
    %c0_25 = arith.constant 0 : index
    %34 = vector.load %arg9[%c0_24, %c0_25] : memref<256x128xbf16, #tpu.memory_space<vmem>>, vector<256x128xbf16>
    tpu.vector_store %arg9[%c0_24, %c0_25], %33 {strides = array<i32>} : memref<256x128xbf16, #tpu.memory_space<vmem>>, vector<256x128xbf16>,
    return
  }
  func.func @transform_0(%arg0: i32) -> (i32, i32) {
    %c0_i32 = arith.constant 0 : i32
    %c0_i32_0 = arith.constant 0 : i32
    return %arg0, %c0_i32 : i32, i32
  }
  func.func @transform_1(%arg0: i32) -> (i32, i32) {
    %c0_i32 = arith.constant 0 : i32
    %c0_i32_0 = arith.constant 0 : i32
    return %arg0, %c0_i32 : i32, i32
  }
  func.func @transform_2(%arg0: i32) -> (i32, i32) {
    %c0_i32 = arith.constant 0 : i32
    %c0_i32_0 = arith.constant 0 : i32
    %c0_i32_1 = arith.constant 0 : i32
    return %c0_i32, %c0_i32_0 : i32, i32
  }
  func.func @transform_3(%arg0: i32) -> (i32, i32) {
    %c0_i32 = arith.constant 0 : i32
    %c0_i32_0 = arith.constant 0 : i32
    %c0_i32_1 = arith.constant 0 : i32
    return %c0_i32, %c0_i32_0 : i32, i32
  }
  func.func @transform_4(%arg0: i32) -> (i32, i32) {
    %c0_i32 = arith.constant 0 : i32
    %c0_i32_0 = arith.constant 0 : i32
    %c0_i32_1 = arith.constant 0 : i32
    return %c0_i32, %c0_i32_0 : i32, i32
  }
  func.func @transform_5(%arg0: i32) -> (i32, i32) {
    %c0_i32 = arith.constant 0 : i32
    %c0_i32_0 = arith.constant 0 : i32
    %c0_i32_1 = arith.constant 0 : i32
    return %c0_i32, %c0_i32_0 : i32, i32
  }
  func.func @transform_6(%arg0: i32) -> (i32, i32) {
    %c0_i32 = arith.constant 0 : i32
    %c0_i32_0 = arith.constant 0 : i32
    %c0_i32_1 = arith.constant 0 : i32
    return %c0_i32, %c0_i32_0 : i32, i32
  }
  func.func @transform_7(%arg0: i32) -> (i32, i32) {
    %c0_i32 = arith.constant 0 : i32
    %c0_i32_0 = arith.constant 0 : i32
    %c0_i32_1 = arith.constant 0 : i32
    return %c0_i32, %c0_i32_0 : i32, i32
  }
  func.func @transform_8(%arg0: i32) -> (i32, i32) {
    %c0_i32 = arith.constant 0 : i32
    %c0_i32_0 = arith.constant 0 : i32
    return %arg0, %c0_i32 : i32, i32
  }
}

</mosaic_0001>

<bundles_post_ra>
// kernel: tpu_custom_call.1
= control target key start
LH: loop header
LB: loop body
LE: loop exit
PB: predicated region body
PF: predicated region fallthrough
CT: control target
= control target key end

     0   :  { %13 = vsyncpa [#allocation3], 0  ;;  %vm111_vm0 = vcmask 523264   ;;  %vm807_vm1 = vcmask 1041408   ;;  %vm417_vm2 = vcmask 261120   ;;  %vm758_vm3 = vcmask 31744   ;;  %s3055_s0 = inlined_call_operand.vmem [shape: f32[200,64], index: 0, kind: input, shape index: {}]   ;;  %s3056_s1 = inlined_call_operand.vmem [shape: f32[200,4], index: 1, kind: input, shape index: {}]   ;;  %s3057_s2 = inlined_call_operand.vmem [shape: bf16[64,32], index: 2, kind: input, shape index: {}]   ;;  %s3058_s3 = inlined_call_operand.vmem [shape: bf16[32,16], index: 3, kind: input, shape index: {}]   ;;  %s3059_s4 = inlined_call_operand.vmem [shape: bf16[16,32], index: 4, kind: input, shape index: {}]   ;;  %s3060_s5 = inlined_call_operand.vmem [shape: bf16[4,32], index: 5, kind: input, shape index: {}]   ;;  %s3061_s6 = inlined_call_operand.vmem [shape: bf16[32,64], index: 6, kind: input, shape index: {}]   ;;  %s3062_s7 = inlined_call_operand.vmem [shape: bf16[64,128], index: 7, kind: input, shape index: {}]   ;;  %s3063_s8 = inlined_call_operand.hbm [shape: bf16[200,128], index: 8, kind: output, shape index: {}]  }
   0x1   :  { %v2624_v0 = vld [vmem:[%s3057_s2] sm:$0xff]   ;;  %v2625_v1 = vld [vmem:[%s3057_s2 + $0x8] sm:$0xff]   ;;  %v2626_v4 = vld [vmem:[%s3057_s2 + $0x10] sm:$0xff]   ;;  %vm978_vm4 = vcmask 130048  }
   0x2   :  { %2368 = vmatprep.subr.bf16.mxu0 %v2624_v0  ;;  %v31_v2 = vld [vmem:[%s3055_s0] sm:$0xff]  ;;  %v32_v3 = vld [vmem:[%s3055_s0 + $0x8] sm:$0xff]  ;;  %v2627_v6 = vld [vmem:[%s3057_s2 + $0x18] sm:$0xff]  }
   0x3   :  { %2369 = vmatpush3.bf16.msra.mxu0 %v2624_v0  ;;  %v63_v5 = vpack.c.bf16 %v32_v3, %v31_v2  ;;  %v33_v7 = vld [vmem:[%s3055_s0 + $0x10] sm:$0xff]  ;;  %v34_v8 = vld [vmem:[%s3055_s0 + $0x18] sm:$0xff]  ;;  %v35_v9 = vld [vmem:[%s3055_s0 + $0x20] sm:$0xff] }
   0x4   :  { %2370 = vmatprep.subr.bf16.mxu0 %v2625_v1  ;;  %v36_v10 = vld [vmem:[%s3055_s0 + $0x28] sm:$0xff]  ;;  %v64_v11 = vpack.c.bf16 %v34_v8, %v33_v7  ;;  %v37_v13 = vld [vmem:[%s3055_s0 + $0x30] sm:$0xff]  ;;  %v38_v14 = vld [vmem:[%s3055_s0 + $0x38] sm:$0xff] }
   0x5   :  { %2376 = vmatprep.mubr.msk.bf16.mxu0 %vm111_vm0, %v63_v5  ;;  %v65_v12 = vpack.c.bf16 %v36_v10, %v35_v9  ;;  %v39_v15 = vld [vmem:[%s3055_s0 + $0x40] sm:$0xff]  ;;  %v40_v16 = vld [vmem:[%s3055_s0 + $0x48] sm:$0xff]  ;;  %v66_v17 = vpack.c.bf16 %v38_v14, %v37_v13  ;;  %v41_v19 = vld [vmem:[%s3055_s0 + $0x50] sm:$0xff] }
   0x6   :  { %v67_v18 = vpack.c.bf16 %v40_v16, %v39_v15  ;;  %v42_v20 = vld [vmem:[%s3055_s0 + $0x58] sm:$0xff]  ;;  %v43_v21 = vld [vmem:[%s3055_s0 + $0x60] sm:$0xff]  ;;  %v44_v22 = vld [vmem:[%s3055_s0 + $0x68] sm:$0xff] }
   0x7   :  { %2371 = vmatpush3.bf16.msra.mxu0 %v2625_v1  ;;  %v68_v23 = vpack.c.bf16 %v42_v20, %v41_v19  ;;  %v69_v24 = vpack.c.bf16 %v44_v22, %v43_v21  ;;  %v45_v25 = vld [vmem:[%s3055_s0 + $0x70] sm:$0xff]  ;;  %v46_v26 = vld [vmem:[%s3055_s0 + $0x78] sm:$0xff]  ;;  %v47_v27 = vld [vmem:[%s3055_s0 + $0x80] sm:$0xff] }
   0x8   :  { %2372 = vmatprep.subr.bf16.mxu0 %v2626_v4  ;;  %v48_v28 = vld [vmem:[%s3055_s0 + $0x88] sm:$0xff]  ;;  %v70_v29 = vpack.c.bf16 %v46_v26, %v45_v25  ;;  %v49_v31 = vld [vmem:[%s3055_s0 + $0x90] sm:$0xff]  ;;  %v50_v32 = vld [vmem:[%s3055_s0 + $0x98] sm:$0xff] }
   0x9   :  { %v71_v30 = vpack.c.bf16 %v48_v28, %v47_v27  ;;  %v51_v33 = vld [vmem:[%s3055_s0 + $0xa0] sm:$0xff]  ;;  %v52_v34 = vld [vmem:[%s3055_s0 + $0xa8] sm:$0xff]  ;;  %v72_v35 = vpack.c.bf16 %v50_v32, %v49_v31  ;;  %v53_v37 = vld [vmem:[%s3055_s0 + $0xb0] sm:$0xff] }
   0xa   :  { %v73_v36 = vpack.c.bf16 %v52_v34, %v51_v33  ;;  %v54_v38 = vld [vmem:[%s3055_s0 + $0xb8] sm:$0xff]  ;;  %v55_v39 = vld [vmem:[%s3055_s0 + $0xc0] sm:$0xff]  ;;  %v56_v40 = vld [vmem:[%s3055_s0 + $0xc8] sm:$0xff] }
   0xb   :  { %2373 = vmatpush3.bf16.msra.mxu0 %v2626_v4  ;;  %v74_v41 = vpack.c.bf16 %v54_v38, %v53_v37  ;;  %v75_v42 = vpack.c.bf16 %v56_v40, %v55_v39  ;;  %v57_v43 = vld [vmem:[%s3055_s0 + $0xd0] sm:$0xff]  ;;  %v58_v44 = vld [vmem:[%s3055_s0 + $0xd8] sm:$0xff]  ;;  %v59_v45 = vld [vmem:[%s3055_s0 + $0xe0] sm:$0xff] }
   0xc   :  { %2374 = vmatprep.subr.bf16.mxu0 %v2627_v6  ;;  %v60_v46 = vld [vmem:[%s3055_s0 + $0xe8] sm:$0xff]  ;;  %v76_v47 = vpack.c.bf16 %v58_v44, %v57_v43  ;;  %v61_v49 = vld [vmem:[%s3055_s0 + $0xf0] sm:$0xff]  ;;  %v62_v50 = vld [vmem:[%s3055_s0 + $0xf8] sm:$0xff] }
   0xd   :  { %v77_v48 = vpack.c.bf16 %v60_v46, %v59_v45  ;;  %v78_v51 = vpack.c.bf16 %v62_v50, %v61_v49  ;;  %v2628_v52 = vld [vmem:[%s3058_s3] sm:$0xff]   ;;  %v2629_v53 = vld [vmem:[%s3058_s3 + $0x8] sm:$0xff]  }
   0xe   :  { %2408 = vmatprep.subr.bf16.mxu1 %v2628_v52  ;;  %v757_v54 = vld [vmem:[%s3060_s5] sm:$0x3] }
   0xf   :  { %2375 = vmatpush3.bf16.msra.mxu0 %v2627_v6  ;;  %2409 = vmatpush3.bf16.msra.mxu1 %v2628_v52  ;;  %v809_v55 = vsel %vm807_vm1, %v757_v54, 0  ;;  %v2845_v9 = vld [vmem:[%s3059_s4] sm:$0xff]  }
  0x10   :  { %2410 = vmatprep.subr.bf16.mxu1 %v2629_v53 }
  0x12   :  { %2377 = vmatmul.mubr.msk.bf16.vlgmr.msra.gmra.mrb[0].mxu0 %vm111_vm0, %v64_v11 }
  0x13   :  { %2380 = vmatprep.mubr.msk.bf16.mxu0 %vm111_vm0, %v65_v12  ;;  %2411 = vmatpush3.bf16.msra.mxu1 %v2629_v53 }
  0x14   :  { %2620 = vmatprep.subr.msk.bf16.mxu1 %vm807_vm1, %v757_v54 }
  0x1a   :  { %2381 = vmatmul.mubr.msk.bf16.gmra.mrb[4].mxu0 %vm111_vm0, %v66_v17 }
  0x1b   :  { %2384 = vmatprep.mubr.msk.bf16.mxu0 %vm111_vm0, %v67_v18 }
  0x22   :  { %2385 = vmatmul.mubr.msk.bf16.gmra.mrb[8].mxu0 %vm111_vm0, %v68_v23 }
  0x23   :  { %2388 = vmatprep.mubr.msk.bf16.mxu0 %vm111_vm0, %v69_v24 }
  0x2a   :  { %2389 = vmatmul.mubr.msk.bf16.gmra.mrb[12].mxu0 %vm111_vm0, %v70_v29 }
  0x2b   :  { %2392 = vmatprep.mubr.msk.bf16.mxu0 %vm111_vm0, %v71_v30 }
  0x32   :  { %2393 = vmatmul.mubr.msk.bf16.gmra.mrb[16].mxu0 %vm111_vm0, %v72_v35 }
  0x33   :  { %2396 = vmatprep.mubr.msk.bf16.mxu0 %vm111_vm0, %v73_v36 }
  0x3a   :  { %2397 = vmatmul.mubr.msk.bf16.gmra.mrb[20].mxu0 %vm111_vm0, %v74_v41 }
  0x3b   :  { %2400 = vmatprep.mubr.msk.bf16.mxu0 %vm111_vm0, %v75_v42 }
  0x42   :  { %2401 = vmatmul.mubr.msk.bf16.gmra.mrb[24].mxu0 %vm111_vm0, %v76_v47 }
  0x43   :  { %2404 = vmatprep.mubr.msk.bf16.mxu0 %vm111_vm0, %v77_v48 }
  0x4a   :  { %2405 = vmatmul.mubr.msk.bf16.gmra.mrb[28].mxu0 %vm111_vm0, %v78_v51 }
  0xe5   :  { %v2378_v56 = vpop.f32.mrb[0].mxu0 }
  0xe6   :  { %v323_v57 = vmul.f32 0.2, %v2378_v56  ;;  %v194_v58 = vpop.f32.mrb[1].mxu0 }
  0xe7   :  { %v321_v59 = vmul.f32 0.2, %v194_v58  ;;  %v2379_v60 = vpop.f32.mrb[2].mxu0 }
  0xe8   :  { %v324_v61 = vmul.f32 0.2, %v2379_v60  ;;  %v197_v62 = vpop.f32.mrb[3].mxu0  ;;  %v355_v0 = vmax.f32 %v2378_v56, %v323_v57 }
  0xe9   :  { %v322_v63 = vmul.f32 0.2, %v197_v62  ;;  %v353_v2 = vmax.f32 %v194_v58, %v321_v59 }
  0xea   :  { %v356_v1 = vmax.f32 %v2379_v60, %v324_v61 }
  0xeb   :  { %v354_v3 = vmax.f32 %v197_v62, %v322_v63 }
  0xec   :  { %v386_v4 = vpack.c.bf16 %v356_v1, %v355_v0 }
  0xed   :  { %v2382_v5 = vpop.f32.mrb[4].mxu0  ;;  %v385_v6 = vpack.c.bf16 %v354_v3, %v353_v2 }
  0xee   :  { %v327_v7 = vmul.f32 0.2, %v2382_v5  ;;  %v210_v8 = vpop.f32.mrb[5].mxu0 }
  0xef   :  { %v325_v10 = vmul.f32 0.2, %v210_v8  ;;  %v2383_v11 = vpop.f32.mrb[6].mxu0  ;;  %2412 = vmatprep.mubr.msk.bf16.mxu1 %vm417_vm2, %v385_v6 }
  0xf0   :  { %v328_v12 = vmul.f32 0.2, %v2383_v11  ;;  %v213_v13 = vpop.f32.mrb[7].mxu0  ;;  %2413 = vmatmul.mubr.msk.bf16.vlgmr.msra.gmra.mrb[0].mxu1 %vm417_vm2, %v386_v4  ;;  %v359_v15 = vmax.f32 %v2382_v5, %v327_v7 }
  0xf1   :  { %v326_v14 = vmul.f32 0.2, %v213_v13  ;;  %2445 = vmatpush3.bf16.msra.mxu1 %v809_v55  ;;  %v357_v17 = vmax.f32 %v210_v8, %v325_v10 }
  0xf2   :  { %v360_v16 = vmax.f32 %v2383_v11, %v328_v12  ;;  %2478 = vmatprep.subr.bf16.mxu1 %v2845_v9 }
  0xf3   :  { %v358_v18 = vmax.f32 %v213_v13, %v326_v14 }
  0xf4   :  { %v388_v19 = vpack.c.bf16 %v360_v16, %v359_v15 }
  0xf5   :  { %v387_v20 = vpack.c.bf16 %v358_v18, %v357_v17  ;;  %v2386_v21 = vpop.f32.mrb[8].mxu0 }
  0xf6   :  { %v331_v22 = vmul.f32 0.2, %v2386_v21  ;;  %v226_v23 = vpop.f32.mrb[9].mxu0 }
  0xf7   :  { %v329_v24 = vmul.f32 0.2, %v226_v23  ;;  %v2387_v25 = vpop.f32.mrb[10].mxu0  ;;  %2416 = vmatprep.mubr.msk.bf16.mxu1 %vm417_vm2, %v387_v20 }
  0xf8   :  { %v332_v26 = vmul.f32 0.2, %v2387_v25  ;;  %v229_v27 = vpop.f32.mrb[11].mxu0  ;;  %2417 = vmatmul.mubr.msk.bf16.gmra.mrb[4].mxu1 %vm417_vm2, %v388_v19  ;;  %v363_v29 = vmax.f32 %v2386_v21, %v331_v22 }
  0xf9   :  { %v330_v28 = vmul.f32 0.2, %v229_v27  ;;  %v361_v31 = vmax.f32 %v226_v23, %v329_v24 }
  0xfa   :  { %v364_v30 = vmax.f32 %v2387_v25, %v332_v26 }
  0xfb   :  { %v362_v32 = vmax.f32 %v229_v27, %v330_v28 }
  0xfc   :  { %v390_v33 = vpack.c.bf16 %v364_v30, %v363_v29 }
  0xfd   :  { %v389_v34 = vpack.c.bf16 %v362_v32, %v361_v31  ;;  %v2390_v35 = vpop.f32.mrb[12].mxu0 }
  0xfe   :  { %v335_v36 = vmul.f32 0.2, %v2390_v35  ;;  %v242_v37 = vpop.f32.mrb[13].mxu0 }
  0xff   :  { %v333_v38 = vmul.f32 0.2, %v242_v37  ;;  %v2391_v39 = vpop.f32.mrb[14].mxu0  ;;  %2420 = vmatprep.mubr.msk.bf16.mxu1 %vm417_vm2, %v389_v34 }
 0x100   :  { %v336_v40 = vmul.f32 0.2, %v2391_v39  ;;  %v245_v41 = vpop.f32.mrb[15].mxu0  ;;  %2421 = vmatmul.mubr.msk.bf16.gmra.mrb[8].mxu1 %vm417_vm2, %v390_v33  ;;  %v367_v43 = vmax.f32 %v2390_v35, %v335_v36 }
 0x101   :  { %v334_v42 = vmul.f32 0.2, %v245_v41  ;;  %v365_v45 = vmax.f32 %v242_v37, %v333_v38  ;;  %v707_v38 = vld [vmem:[%s3056_s1] sm:$0xff] }
 0x102   :  { %v368_v44 = vmax.f32 %v2391_v39, %v336_v40  ;;  %v708_v39 = vld [vmem:[%s3056_s1 + $0x8] sm:$0xff] }
 0x103   :  { %v366_v46 = vmax.f32 %v245_v41, %v334_v42 }
 0x104   :  { %v392_v47 = vpack.c.bf16 %v368_v44, %v367_v43  ;;  %v739_v44 = vpack.c.bf16 %v708_v39, %v707_v38 }
 0x105   :  { %v391_v48 = vpack.c.bf16 %v366_v46, %v365_v45  ;;  %v2394_v49 = vpop.f32.mrb[16].mxu0  ;;  %v709_v45 = vld [vmem:[%s3056_s1 + $0x10] sm:$0xff]  ;;  %v710_v46 = vld [vmem:[%s3056_s1 + $0x18] sm:$0xff] }
 0x106   :  { %v339_v50 = vmul.f32 0.2, %v2394_v49  ;;  %v258_v51 = vpop.f32.mrb[17].mxu0 }
 0x107   :  { %v337_v52 = vmul.f32 0.2, %v258_v51  ;;  %v2395_v53 = vpop.f32.mrb[18].mxu0  ;;  %2424 = vmatprep.mubr.msk.bf16.mxu1 %vm417_vm2, %v391_v48  ;;  %v712_v48 = vld [vmem:[%s3056_s1 + $0x28] sm:$0xff] }
 0x108   :  { %v340_v54 = vmul.f32 0.2, %v2395_v53  ;;  %v261_v55 = vpop.f32.mrb[19].mxu0  ;;  %2425 = vmatmul.mubr.msk.bf16.gmra.mrb[12].mxu1 %vm417_vm2, %v392_v47  ;;  %v371_v57 = vmax.f32 %v2394_v49, %v339_v50  ;;  %v711_v47 = vld [vmem:[%s3056_s1 + $0x20] sm:$0xff]  ;;  %v740_v49 = vpack.c.bf16 %v710_v46, %v709_v45 }
 0x109   :  { %v338_v56 = vmul.f32 0.2, %v261_v55  ;;  %v369_v59 = vmax.f32 %v258_v51, %v337_v52  ;;  %v741_v50 = vpack.c.bf16 %v712_v48, %v711_v47  ;;  %v713_v51 = vld [vmem:[%s3056_s1 + $0x30] sm:$0xff]  ;;  %v714_v52 = vld [vmem:[%s3056_s1 + $0x38] sm:$0xff] }
 0x10a   :  { %v372_v58 = vmax.f32 %v2395_v53, %v340_v54  ;;  %v715_v53 = vld [vmem:[%s3056_s1 + $0x40] sm:$0xff]  ;;  %v716_v54 = vld [vmem:[%s3056_s1 + $0x48] sm:$0xff] }
 0x10b   :  { %v370_v60 = vmax.f32 %v261_v55, %v338_v56  ;;  %v742_v55 = vpack.c.bf16 %v714_v52, %v713_v51  ;;  %v717_v56 = vld [vmem:[%s3056_s1 + $0x50] sm:$0xff] }
 0x10c   :  { %v394_v61 = vpack.c.bf16 %v372_v58, %v371_v57  ;;  %v718_v57 = vld [vmem:[%s3056_s1 + $0x58] sm:$0xff]  ;;  %v719_v58 = vld [vmem:[%s3056_s1 + $0x60] sm:$0xff] }
 0x10d   :  { %v393_v62 = vpack.c.bf16 %v370_v60, %v369_v59  ;;  %v2398_v63 = vpop.f32.mrb[20].mxu0  ;;  %v720_v59 = vld [vmem:[%s3056_s1 + $0x68] sm:$0xff]  ;;  %v744_v60 = vpack.c.bf16 %v718_v57, %v717_v56 }
 0x10e   :  { %v343_v0 = vmul.f32 0.2, %v2398_v63  ;;  %v274_v1 = vpop.f32.mrb[21].mxu0 }
 0x10f   :  { %v341_v2 = vmul.f32 0.2, %v274_v1  ;;  %v2399_v3 = vpop.f32.mrb[22].mxu0  ;;  %2428 = vmatprep.mubr.msk.bf16.mxu1 %vm417_vm2, %v393_v62  ;;  %v721_v62 = vld [vmem:[%s3056_s1 + $0x70] sm:$0xff] }
 0x110   :  { %v344_v4 = vmul.f32 0.2, %v2399_v3  ;;  %v277_v5 = vpop.f32.mrb[23].mxu0  ;;  %2429 = vmatmul.mubr.msk.bf16.gmra.mrb[16].mxu1 %vm417_vm2, %v394_v61  ;;  %v375_v7 = vmax.f32 %v2398_v63, %v343_v0  ;;  %v745_v61 = vpack.c.bf16 %v720_v59, %v719_v58  ;;  %v722_v63 = vld [vmem:[%s3056_s1 + $0x78] sm:$0xff]  ;;  %v723_v0 = vld [vmem:[%s3056_s1 + $0x80] sm:$0xff] }
 0x111   :  { %v342_v6 = vmul.f32 0.2, %v277_v5  ;;  %v373_v10 = vmax.f32 %v274_v1, %v341_v2  ;;  %v724_v1 = vld [vmem:[%s3056_s1 + $0x88] sm:$0xff]  ;;  %v746_v2 = vpack.c.bf16 %v722_v63, %v721_v62 }
 0x112   :  { %v376_v8 = vmax.f32 %v2399_v3, %v344_v4  ;;  %v747_v3 = vpack.c.bf16 %v724_v1, %v723_v0  ;;  %v725_v4 = vld [vmem:[%s3056_s1 + $0x90] sm:$0xff] }
 0x113   :  { %v374_v11 = vmax.f32 %v277_v5, %v342_v6  ;;  %v726_v5 = vld [vmem:[%s3056_s1 + $0x98] sm:$0xff]  ;;  %v727_v6 = vld [vmem:[%s3056_s1 + $0xa0] sm:$0xff] }
 0x114   :  { %v396_v12 = vpack.c.bf16 %v376_v8, %v375_v7  ;;  %v728_v7 = vld [vmem:[%s3056_s1 + $0xa8] sm:$0xff]  ;;  %v748_v8 = vpack.c.bf16 %v726_v5, %v725_v4 }
 0x115   :  { %v395_v13 = vpack.c.bf16 %v374_v11, %v373_v10  ;;  %v2402_v14 = vpop.f32.mrb[24].mxu0  ;;  %v749_v10 = vpack.c.bf16 %v728_v7, %v727_v6  ;;  %v729_v11 = vld [vmem:[%s3056_s1 + $0xb0] sm:$0xff] }
 0x116   :  { %v347_v15 = vmul.f32 0.2, %v2402_v14  ;;  %v290_v16 = vpop.f32.mrb[25].mxu0 }
 0x117   :  { %v345_v17 = vmul.f32 0.2, %v290_v16  ;;  %v2403_v18 = vpop.f32.mrb[26].mxu0  ;;  %2432 = vmatprep.mubr.msk.bf16.mxu1 %vm417_vm2, %v395_v13  ;;  %v731_v13 = vld [vmem:[%s3056_s1 + $0xc0] sm:$0xff] }
 0x118   :  { %v348_v19 = vmul.f32 0.2, %v2403_v18  ;;  %v293_v20 = vpop.f32.mrb[27].mxu0  ;;  %2433 = vmatmul.mubr.msk.bf16.gmra.mrb[20].mxu1 %vm417_vm2, %v396_v12  ;;  %v379_v22 = vmax.f32 %v2402_v14, %v347_v15  ;;  %v730_v12 = vld [vmem:[%s3056_s1 + $0xb8] sm:$0xff]  ;;  %v732_v14 = vld [vmem:[%s3056_s1 + $0xc8] sm:$0xff] }
 0x119   :  { %v346_v21 = vmul.f32 0.2, %v293_v20  ;;  %v377_v24 = vmax.f32 %v290_v16, %v345_v17  ;;  %v750_v15 = vpack.c.bf16 %v730_v12, %v729_v11  ;;  %v751_v16 = vpack.c.bf16 %v732_v14, %v731_v13  ;;  %v733_v17 = vld [vmem:[%s3056_s1 + $0xd0] sm:$0xff] }
 0x11a   :  { %v380_v23 = vmax.f32 %v2403_v18, %v348_v19  ;;  %v734_v18 = vld [vmem:[%s3056_s1 + $0xd8] sm:$0xff]  ;;  %v735_v19 = vld [vmem:[%s3056_s1 + $0xe0] sm:$0xff] }
 0x11b   :  { %v378_v25 = vmax.f32 %v293_v20, %v346_v21  ;;  %v736_v20 = vld [vmem:[%s3056_s1 + $0xe8] sm:$0xff]  ;;  %v752_v21 = vpack.c.bf16 %v734_v18, %v733_v17 }
 0x11c   :  { %v398_v26 = vpack.c.bf16 %v380_v23, %v379_v22  ;;  %v753_v22 = vpack.c.bf16 %v736_v20, %v735_v19  ;;  %v737_v23 = vld [vmem:[%s3056_s1 + $0xf0] sm:$0xff] }
 0x11d   :  { %v397_v27 = vpack.c.bf16 %v378_v25, %v377_v24  ;;  %v2406_v28 = vpop.f32.mrb[28].mxu0  ;;  %v738_v24 = vld [vmem:[%s3056_s1 + $0xf8] sm:$0xff] }
 0x11e   :  { %v351_v29 = vmul.f32 0.2, %v2406_v28  ;;  %v306_v30 = vpop.f32.mrb[29].mxu0  ;;  %v754_v25 = vpack.c.bf16 %v738_v24, %v737_v23 }
 0x11f   :  { %v349_v31 = vmul.f32 0.2, %v306_v30  ;;  %v2407_v32 = vpop.f32.mrb[30].mxu0  ;;  %2436 = vmatprep.mubr.msk.bf16.mxu1 %vm417_vm2, %v397_v27  ;;  %v2632_v27 = vld [vmem:[%s3061_s6 + $0x8] sm:$0xff]  }
 0x120   :  { %v352_v33 = vmul.f32 0.2, %v2407_v32  ;;  %v309_v34 = vpop.f32.mrb[31].mxu0  ;;  %2437 = vmatmul.mubr.msk.bf16.gmra.mrb[24].mxu1 %vm417_vm2, %v398_v26  ;;  %v383_v36 = vmax.f32 %v2406_v28, %v351_v29  ;;  %v2631_v26 = vld [vmem:[%s3061_s6] sm:$0xff]  }
 0x121   :  { %v350_v35 = vmul.f32 0.2, %v309_v34  ;;  %v381_v40 = vmax.f32 %v306_v30, %v349_v31  ;;  %2512 = vmatprep.subr.bf16.mxu0 %v2631_v26 }
 0x122   :  { %v384_v37 = vmax.f32 %v2407_v32, %v352_v33  ;;  %2513 = vmatpush3.bf16.msra.mxu0 %v2631_v26 }
 0x123   :  { %v382_v41 = vmax.f32 %v309_v34, %v350_v35  ;;  %2514 = vmatprep.subr.bf16.mxu0 %v2632_v27 }
 0x124   :  { %v400_v42 = vpack.c.bf16 %v384_v37, %v383_v36 }
 0x125   :  { %v399_v43 = vpack.c.bf16 %v382_v41, %v381_v40 }
 0x126   :  { %2515 = vmatpush3.bf16.msra.mxu0 %v2632_v27 }
 0x127   :  { %2440 = vmatprep.mubr.msk.bf16.mxu1 %vm417_vm2, %v399_v43 }
 0x128   :  { %2441 = vmatmul.mubr.msk.bf16.gmra.mrb[28].mxu1 %vm417_vm2, %v400_v42 }
 0x129   :  { %2446 = vmatprep.mubr.msk.bf16.mxu1 %vm758_vm3, %v739_v44 }
 0x130   :  { %2447 = vmatmul.mubr.msk.bf16.vlgmr.msra.gmra.mrb[32].mxu1 %vm758_vm3, %v740_v49 }
 0x131   :  { %2479 = vmatpush3.bf16.msra.mxu1 %v2845_v9  ;;  %2450 = vmatprep.mubr.msk.bf16.mxu1 %vm758_vm3, %v741_v50  ;;  %v743_v9 = vpack.c.bf16 %v716_v54, %v715_v53 }
 0x138   :  { %2451 = vmatmul.mubr.msk.bf16.gmra.mrb[36].mxu1 %vm758_vm3, %v742_v55 }
 0x139   :  { %2454 = vmatprep.mubr.msk.bf16.mxu1 %vm758_vm3, %v743_v9 }
 0x140   :  { %2455 = vmatmul.mubr.msk.bf16.gmra.mrb[40].mxu1 %vm758_vm3, %v744_v60 }
 0x141   :  { %2458 = vmatprep.mubr.msk.bf16.mxu1 %vm758_vm3, %v745_v61 }
 0x148   :  { %2459 = vmatmul.mubr.msk.bf16.gmra.mrb[44].mxu1 %vm758_vm3, %v746_v2 }
 0x149   :  { %2462 = vmatprep.mubr.msk.bf16.mxu1 %vm758_vm3, %v747_v3 }
 0x150   :  { %2463 = vmatmul.mubr.msk.bf16.gmra.mrb[48].mxu1 %vm758_vm3, %v748_v8 }
 0x151   :  { %2466 = vmatprep.mubr.msk.bf16.mxu1 %vm758_vm3, %v749_v10 }
 0x158   :  { %2467 = vmatmul.mubr.msk.bf16.gmra.mrb[52].mxu1 %vm758_vm3, %v750_v15 }
 0x159   :  { %2470 = vmatprep.mubr.msk.bf16.mxu1 %vm758_vm3, %v751_v16 }
 0x160   :  { %2471 = vmatmul.mubr.msk.bf16.gmra.mrb[56].mxu1 %vm758_vm3, %v752_v21 }
 0x161   :  { %2474 = vmatprep.mubr.msk.bf16.mxu1 %vm758_vm3, %v753_v22 }
 0x168   :  { %2475 = vmatmul.mubr.msk.bf16.gmra.mrb[60].mxu1 %vm758_vm3, %v754_v25 }
 0x1c3   :  { %v2414_v28 = vpop.f32.mrb[0].mxu1 }
 0x1c4   :  { %v629_v29 = vmul.f32 0.2, %v2414_v28  ;;  %v500_v30 = vpop.f32.mrb[1].mxu1 }
 0x1c5   :  { %v627_v31 = vmul.f32 0.2, %v500_v30  ;;  %v2415_v32 = vpop.f32.mrb[2].mxu1 }
 0x1c6   :  { %v630_v33 = vmul.f32 0.2, %v2415_v32  ;;  %v503_v34 = vpop.f32.mrb[3].mxu1  ;;  %v661_v36 = vmax.f32 %v2414_v28, %v629_v29 }
 0x1c7   :  { %v628_v35 = vmul.f32 0.2, %v503_v34  ;;  %v659_v38 = vmax.f32 %v500_v30, %v627_v31 }
 0x1c8   :  { %v662_v37 = vmax.f32 %v2415_v32, %v630_v33 }
 0x1c9   :  { %v660_v39 = vmax.f32 %v503_v34, %v628_v35 }
 0x1ca   :  { %v692_v40 = vpack.c.bf16 %v662_v37, %v661_v36 }
 0x1cb   :  { %v691_v41 = vpack.c.bf16 %v660_v39, %v659_v38  ;;  %v2418_v42 = vpop.f32.mrb[4].mxu1 }
 0x1cc   :  { %v633_v43 = vmul.f32 0.2, %v2418_v42  ;;  %v516_v44 = vpop.f32.mrb[5].mxu1 }
 0x1cd   :  { %v631_v45 = vmul.f32 0.2, %v516_v44  ;;  %v2419_v46 = vpop.f32.mrb[6].mxu1  ;;  %2480 = vmatprep.mubr.msk.bf16.mxu1 %vm978_vm4, %v691_v41 }
 0x1ce   :  { %v634_v47 = vmul.f32 0.2, %v2419_v46  ;;  %v519_v48 = vpop.f32.mrb[7].mxu1  ;;  %2481 = vmatmul.mubr.msk.bf16.vlgmr.msra.gmra.mrb[32].mxu1 %vm978_vm4, %v692_v40  ;;  %v665_v50 = vmax.f32 %v2418_v42, %v633_v43 }
 0x1cf   :  { %v632_v49 = vmul.f32 0.2, %v519_v48  ;;  %v663_v52 = vmax.f32 %v516_v44, %v631_v45 }
 0x1d0   :  { %v666_v51 = vmax.f32 %v2419_v46, %v634_v47 }
 0x1d1   :  { %v664_v53 = vmax.f32 %v519_v48, %v632_v49 }
 0x1d2   :  { %v694_v54 = vpack.c.bf16 %v666_v51, %v665_v50 }
 0x1d3   :  { %v693_v55 = vpack.c.bf16 %v664_v53, %v663_v52  ;;  %v2422_v9 = vpop.f32.mrb[8].mxu1 }
 0x1d4   :  { %v637_v56 = vmul.f32 0.2, %v2422_v9  ;;  %v532_v57 = vpop.f32.mrb[9].mxu1 }
 0x1d5   :  { %v635_v58 = vmul.f32 0.2, %v532_v57  ;;  %v2423_v59 = vpop.f32.mrb[10].mxu1  ;;  %2484 = vmatprep.mubr.msk.bf16.mxu1 %vm978_vm4, %v693_v55 }
 0x1d6   :  { %v638_v60 = vmul.f32 0.2, %v2423_v59  ;;  %v535_v61 = vpop.f32.mrb[11].mxu1  ;;  %2485 = vmatmul.mubr.msk.bf16.gmra.mrb[36].mxu1 %vm978_vm4, %v694_v54  ;;  %v669_v63 = vmax.f32 %v2422_v9, %v637_v56 }
 0x1d7   :  { %v636_v62 = vmul.f32 0.2, %v535_v61  ;;  %v667_v1 = vmax.f32 %v532_v57, %v635_v58 }
 0x1d8   :  { %v670_v0 = vmax.f32 %v2423_v59, %v638_v60 }
 0x1d9   :  { %v668_v2 = vmax.f32 %v535_v61, %v636_v62 }
 0x1da   :  { %v696_v3 = vpack.c.bf16 %v670_v0, %v669_v63 }
 0x1db   :  { %v695_v4 = vpack.c.bf16 %v668_v2, %v667_v1  ;;  %v2426_v5 = vpop.f32.mrb[12].mxu1 }
 0x1dc   :  { %v641_v6 = vmul.f32 0.2, %v2426_v5  ;;  %v548_v7 = vpop.f32.mrb[13].mxu1 }
 0x1dd   :  { %v639_v8 = vmul.f32 0.2, %v548_v7  ;;  %v2427_v10 = vpop.f32.mrb[14].mxu1  ;;  %2488 = vmatprep.mubr.msk.bf16.mxu1 %vm978_vm4, %v695_v4 }
 0x1de   :  { %v642_v11 = vmul.f32 0.2, %v2427_v10  ;;  %v551_v12 = vpop.f32.mrb[15].mxu1  ;;  %2489 = vmatmul.mubr.msk.bf16.gmra.mrb[40].mxu1 %vm978_vm4, %v696_v3  ;;  %v673_v14 = vmax.f32 %v2426_v5, %v641_v6 }
 0x1df   :  { %v640_v13 = vmul.f32 0.2, %v551_v12  ;;  %v671_v16 = vmax.f32 %v548_v7, %v639_v8 }
 0x1e0   :  { %v674_v15 = vmax.f32 %v2427_v10, %v642_v11 }
 0x1e1   :  { %v672_v17 = vmax.f32 %v551_v12, %v640_v13  ;;  %v2633_v12 = vld [vmem:[%s3062_s7] sm:$0xff]  }
 0x1e2   :  { %v698_v18 = vpack.c.bf16 %v674_v15, %v673_v14  ;;  %2548 = vmatprep.subr.bf16.mxu0 %v2633_v12 }
 0x1e3   :  { %v697_v19 = vpack.c.bf16 %v672_v17, %v671_v16  ;;  %v2430_v20 = vpop.f32.mrb[16].mxu1 }
 0x1e4   :  { %v645_v21 = vmul.f32 0.2, %v2430_v20  ;;  %v564_v22 = vpop.f32.mrb[17].mxu1 }
 0x1e5   :  { %v643_v23 = vmul.f32 0.2, %v564_v22  ;;  %v2431_v24 = vpop.f32.mrb[18].mxu1  ;;  %2492 = vmatprep.mubr.msk.bf16.mxu1 %vm978_vm4, %v697_v19 }
 0x1e6   :  { %v646_v25 = vmul.f32 0.2, %v2431_v24  ;;  %v567_v26 = vpop.f32.mrb[19].mxu1  ;;  %2493 = vmatmul.mubr.msk.bf16.gmra.mrb[44].mxu1 %vm978_vm4, %v698_v18  ;;  %v677_v28 = vmax.f32 %v2430_v20, %v645_v21 }
 0x1e7   :  { %v644_v27 = vmul.f32 0.2, %v567_v26  ;;  %v675_v30 = vmax.f32 %v564_v22, %v643_v23 }
 0x1e8   :  { %v678_v29 = vmax.f32 %v2431_v24, %v646_v25 }
 0x1e9   :  { %v676_v31 = vmax.f32 %v567_v26, %v644_v27 }
 0x1ea   :  { %v700_v32 = vpack.c.bf16 %v678_v29, %v677_v28 }
 0x1eb   :  { %v699_v33 = vpack.c.bf16 %v676_v31, %v675_v30  ;;  %v2434_v34 = vpop.f32.mrb[20].mxu1  ;;  %v2634_v30 = vld [vmem:[%s3062_s7 + $0x8] sm:$0xff]  }
 0x1ec   :  { %v649_v35 = vmul.f32 0.2, %v2434_v34  ;;  %v580_v36 = vpop.f32.mrb[21].mxu1 }
 0x1ed   :  { %v647_v37 = vmul.f32 0.2, %v580_v36  ;;  %v2435_v38 = vpop.f32.mrb[22].mxu1  ;;  %2496 = vmatprep.mubr.msk.bf16.mxu1 %vm978_vm4, %v699_v33 }
 0x1ee   :  { %v650_v39 = vmul.f32 0.2, %v2435_v38  ;;  %v583_v40 = vpop.f32.mrb[23].mxu1  ;;  %2497 = vmatmul.mubr.msk.bf16.gmra.mrb[48].mxu1 %vm978_vm4, %v700_v32  ;;  %v681_v42 = vmax.f32 %v2434_v34, %v649_v35 }
 0x1ef   :  { %v648_v41 = vmul.f32 0.2, %v583_v40  ;;  %v679_v44 = vmax.f32 %v580_v36, %v647_v37 }
 0x1f0   :  { %v682_v43 = vmax.f32 %v2435_v38, %v650_v39  ;;  %v2635_v38 = vld [vmem:[%s3062_s7 + $0x10] sm:$0xff]  }
 0x1f1   :  { %v680_v45 = vmax.f32 %v583_v40, %v648_v41 }
 0x1f2   :  { %v702_v46 = vpack.c.bf16 %v682_v43, %v681_v42 }
 0x1f3   :  { %v701_v47 = vpack.c.bf16 %v680_v45, %v679_v44  ;;  %v2438_v48 = vpop.f32.mrb[24].mxu1 }
 0x1f4   :  { %v653_v49 = vmul.f32 0.2, %v2438_v48  ;;  %v596_v50 = vpop.f32.mrb[25].mxu1 }
 0x1f5   :  { %v651_v51 = vmul.f32 0.2, %v596_v50  ;;  %v2439_v52 = vpop.f32.mrb[26].mxu1  ;;  %2500 = vmatprep.mubr.msk.bf16.mxu1 %vm978_vm4, %v701_v47 }
 0x1f6   :  { %v654_v53 = vmul.f32 0.2, %v2439_v52  ;;  %v599_v54 = vpop.f32.mrb[27].mxu1  ;;  %2501 = vmatmul.mubr.msk.bf16.gmra.mrb[52].mxu1 %vm978_vm4, %v702_v46  ;;  %v685_v9 = vmax.f32 %v2438_v48, %v653_v49  ;;  %v2636_v46 = vld [vmem:[%s3062_s7 + $0x18] sm:$0xff]  }
 0x1f7   :  { %v652_v55 = vmul.f32 0.2, %v599_v54  ;;  %v683_v57 = vmax.f32 %v596_v50, %v651_v51 }
 0x1f8   :  { %v686_v56 = vmax.f32 %v2439_v52, %v654_v53 }
 0x1f9   :  { %v684_v58 = vmax.f32 %v599_v54, %v652_v55 }
 0x1fa   :  { %v704_v59 = vpack.c.bf16 %v686_v56, %v685_v9 }
 0x1fb   :  { %v703_v60 = vpack.c.bf16 %v684_v58, %v683_v57  ;;  %v2442_v61 = vpop.f32.mrb[28].mxu1 }
 0x1fc   :  { %v657_v62 = vmul.f32 0.2, %v2442_v61  ;;  %v612_v63 = vpop.f32.mrb[29].mxu1 }
 0x1fd   :  { %v655_v0 = vmul.f32 0.2, %v612_v63  ;;  %v2443_v1 = vpop.f32.mrb[30].mxu1  ;;  %2504 = vmatprep.mubr.msk.bf16.mxu1 %vm978_vm4, %v703_v60 }
 0x1fe   :  { %v658_v2 = vmul.f32 0.2, %v2443_v1  ;;  %v615_v3 = vpop.f32.mrb[31].mxu1  ;;  %2505 = vmatmul.mubr.msk.bf16.gmra.mrb[56].mxu1 %vm978_vm4, %v704_v59  ;;  %v689_v5 = vmax.f32 %v2442_v61, %v657_v62 }
 0x1ff   :  { %v656_v4 = vmul.f32 0.2, %v615_v3  ;;  %v687_v7 = vmax.f32 %v612_v63, %v655_v0 }
 0x200   :  { %v690_v6 = vmax.f32 %v2443_v1, %v658_v2 }
 0x201   :  { %v688_v8 = vmax.f32 %v615_v3, %v656_v4 }
 0x202   :  { %v706_v10 = vpack.c.bf16 %v690_v6, %v689_v5 }
 0x203   :  { %v705_v11 = vpack.c.bf16 %v688_v8, %v687_v7 }
 0x205   :  { %2508 = vmatprep.mubr.msk.bf16.mxu1 %vm978_vm4, %v705_v11 }
 0x206   :  { %2509 = vmatmul.mubr.msk.bf16.gmra.mrb[60].mxu1 %vm978_vm4, %v706_v10 }
 0x2a1   :  { %v2482_v13 = vpop.f32.mrb[32].mxu1 }
 0x2a2   :  { %v1190_v14 = vmul.f32 0.2, %v2482_v13  ;;  %v1061_v15 = vpop.f32.mrb[33].mxu1 }
 0x2a3   :  { %v1188_v16 = vmul.f32 0.2, %v1061_v15  ;;  %v2483_v17 = vpop.f32.mrb[34].mxu1 }
 0x2a4   :  { %v1191_v18 = vmul.f32 0.2, %v2483_v17  ;;  %v1064_v19 = vpop.f32.mrb[35].mxu1  ;;  %v1222_v21 = vmax.f32 %v2482_v13, %v1190_v14 }
 0x2a5   :  { %v1189_v20 = vmul.f32 0.2, %v1064_v19  ;;  %v1220_v23 = vmax.f32 %v1061_v15, %v1188_v16 }
 0x2a6   :  { %v1223_v22 = vmax.f32 %v2483_v17, %v1191_v18 }
 0x2a7   :  { %v1221_v24 = vmax.f32 %v1064_v19, %v1189_v20 }
 0x2a8   :  { %v1253_v25 = vpack.c.bf16 %v1223_v22, %v1222_v21 }
 0x2a9   :  { %v1252_v26 = vpack.c.bf16 %v1221_v24, %v1220_v23  ;;  %v2486_v27 = vpop.f32.mrb[36].mxu1 }
 0x2aa   :  { %v1194_v28 = vmul.f32 0.2, %v2486_v27  ;;  %v1077_v29 = vpop.f32.mrb[37].mxu1 }
 0x2ab   :  { %v1192_v31 = vmul.f32 0.2, %v1077_v29  ;;  %v2487_v32 = vpop.f32.mrb[38].mxu1  ;;  %2516 = vmatprep.mubr.msk.bf16.mxu0 %vm417_vm2, %v1252_v26 }
 0x2ac   :  { %v1195_v33 = vmul.f32 0.2, %v2487_v32  ;;  %v1080_v34 = vpop.f32.mrb[39].mxu1  ;;  %2517 = vmatmul.mubr.msk.bf16.vlgmr.msra.gmra.mrb[32].mxu0 %vm417_vm2, %v1253_v25  ;;  %v1226_v36 = vmax.f32 %v2486_v27, %v1194_v28 }
 0x2ad   :  { %v1193_v35 = vmul.f32 0.2, %v1080_v34  ;;  %2549 = vmatpush3.bf16.msra.mxu0 %v2633_v12  ;;  %v1224_v39 = vmax.f32 %v1077_v29, %v1192_v31 }
 0x2ae   :  { %v1227_v37 = vmax.f32 %v2487_v32, %v1195_v33  ;;  %2550 = vmatprep.subr.bf16.mxu0 %v2634_v30 }
 0x2af   :  { %v1225_v40 = vmax.f32 %v1080_v34, %v1193_v35 }
 0x2b0   :  { %v1255_v41 = vpack.c.bf16 %v1227_v37, %v1226_v36 }
 0x2b1   :  { %v1254_v42 = vpack.c.bf16 %v1225_v40, %v1224_v39  ;;  %v2490_v43 = vpop.f32.mrb[40].mxu1  ;;  %2551 = vmatpush3.bf16.msra.mxu0 %v2634_v30 }
 0x2b2   :  { %v1198_v44 = vmul.f32 0.2, %v2490_v43  ;;  %v1093_v45 = vpop.f32.mrb[41].mxu1  ;;  %2552 = vmatprep.subr.bf16.mxu0 %v2635_v38 }
 0x2b3   :  { %v1196_v47 = vmul.f32 0.2, %v1093_v45  ;;  %v2491_v48 = vpop.f32.mrb[42].mxu1  ;;  %2520 = vmatprep.mubr.msk.bf16.mxu0 %vm417_vm2, %v1254_v42 }
 0x2b4   :  { %v1199_v49 = vmul.f32 0.2, %v2491_v48  ;;  %v1096_v50 = vpop.f32.mrb[43].mxu1  ;;  %2521 = vmatmul.mubr.msk.bf16.gmra.mrb[36].mxu0 %vm417_vm2, %v1255_v41  ;;  %v1230_v52 = vmax.f32 %v2490_v43, %v1198_v44 }
 0x2b5   :  { %v1197_v51 = vmul.f32 0.2, %v1096_v50  ;;  %2553 = vmatpush3.bf16.msra.mxu0 %v2635_v38  ;;  %v1228_v54 = vmax.f32 %v1093_v45, %v1196_v47 }
 0x2b6   :  { %v1231_v53 = vmax.f32 %v2491_v48, %v1199_v49  ;;  %2554 = vmatprep.subr.bf16.mxu0 %v2636_v46 }
 0x2b7   :  { %v1229_v55 = vmax.f32 %v1096_v50, %v1197_v51 }
 0x2b8   :  { %v1257_v9 = vpack.c.bf16 %v1231_v53, %v1230_v52 }
 0x2b9   :  { %v1256_v56 = vpack.c.bf16 %v1229_v55, %v1228_v54  ;;  %v2494_v57 = vpop.f32.mrb[44].mxu1  ;;  %2555 = vmatpush3.bf16.msra.mxu0 %v2636_v46 }
 0x2ba   :  { %v1202_v58 = vmul.f32 0.2, %v2494_v57  ;;  %v1109_v59 = vpop.f32.mrb[45].mxu1 }
 0x2bb   :  { %v1200_v60 = vmul.f32 0.2, %v1109_v59  ;;  %v2495_v61 = vpop.f32.mrb[46].mxu1  ;;  %2524 = vmatprep.mubr.msk.bf16.mxu0 %vm417_vm2, %v1256_v56 }
 0x2bc   :  { %v1203_v62 = vmul.f32 0.2, %v2495_v61  ;;  %v1112_v63 = vpop.f32.mrb[47].mxu1  ;;  %2525 = vmatmul.mubr.msk.bf16.gmra.mrb[40].mxu0 %vm417_vm2, %v1257_v9  ;;  %v1234_v1 = vmax.f32 %v2494_v57, %v1202_v58 }
 0x2bd   :  { %v1201_v0 = vmul.f32 0.2, %v1112_v63  ;;  %v1232_v3 = vmax.f32 %v1109_v59, %v1200_v60 }
 0x2be   :  { %v1235_v2 = vmax.f32 %v2495_v61, %v1203_v62 }
 0x2bf   :  { %v1233_v4 = vmax.f32 %v1112_v63, %v1201_v0 }
 0x2c0   :  { %v1259_v5 = vpack.c.bf16 %v1235_v2, %v1234_v1 }
 0x2c1   :  { %v1258_v6 = vpack.c.bf16 %v1233_v4, %v1232_v3  ;;  %v2498_v7 = vpop.f32.mrb[48].mxu1 }
 0x2c2   :  { %v1206_v8 = vmul.f32 0.2, %v2498_v7  ;;  %v1125_v10 = vpop.f32.mrb[49].mxu1 }
 0x2c3   :  { %v1204_v11 = vmul.f32 0.2, %v1125_v10  ;;  %v2499_v12 = vpop.f32.mrb[50].mxu1  ;;  %2528 = vmatprep.mubr.msk.bf16.mxu0 %vm417_vm2, %v1258_v6 }
 0x2c4   :  { %v1207_v13 = vmul.f32 0.2, %v2499_v12  ;;  %v1128_v14 = vpop.f32.mrb[51].mxu1  ;;  %2529 = vmatmul.mubr.msk.bf16.gmra.mrb[44].mxu0 %vm417_vm2, %v1259_v5  ;;  %v1238_v16 = vmax.f32 %v2498_v7, %v1206_v8 }
 0x2c5   :  { %v1205_v15 = vmul.f32 0.2, %v1128_v14  ;;  %v1236_v18 = vmax.f32 %v1125_v10, %v1204_v11 }
 0x2c6   :  { %v1239_v17 = vmax.f32 %v2499_v12, %v1207_v13 }
 0x2c7   :  { %v1237_v19 = vmax.f32 %v1128_v14, %v1205_v15 }
 0x2c8   :  { %v1261_v20 = vpack.c.bf16 %v1239_v17, %v1238_v16 }
 0x2c9   :  { %v1260_v21 = vpack.c.bf16 %v1237_v19, %v1236_v18  ;;  %v2502_v22 = vpop.f32.mrb[52].mxu1 }
 0x2ca   :  { %v1210_v23 = vmul.f32 0.2, %v2502_v22  ;;  %v1141_v24 = vpop.f32.mrb[53].mxu1 }
 0x2cb   :  { %v1208_v25 = vmul.f32 0.2, %v1141_v24  ;;  %v2503_v26 = vpop.f32.mrb[54].mxu1  ;;  %2532 = vmatprep.mubr.msk.bf16.mxu0 %vm417_vm2, %v1260_v21 }
 0x2cc   :  { %v1211_v27 = vmul.f32 0.2, %v2503_v26  ;;  %v1144_v28 = vpop.f32.mrb[55].mxu1  ;;  %2533 = vmatmul.mubr.msk.bf16.gmra.mrb[48].mxu0 %vm417_vm2, %v1261_v20  ;;  %v1242_v30 = vmax.f32 %v2502_v22, %v1210_v23 }
 0x2cd   :  { %v1209_v29 = vmul.f32 0.2, %v1144_v28  ;;  %v1240_v32 = vmax.f32 %v1141_v24, %v1208_v25 }
 0x2ce   :  { %v1243_v31 = vmax.f32 %v2503_v26, %v1211_v27 }
 0x2cf   :  { %v1241_v33 = vmax.f32 %v1144_v28, %v1209_v29 }
 0x2d0   :  { %v1263_v34 = vpack.c.bf16 %v1243_v31, %v1242_v30 }
 0x2d1   :  { %v1262_v35 = vpack.c.bf16 %v1241_v33, %v1240_v32  ;;  %v2506_v36 = vpop.f32.mrb[56].mxu1 }
 0x2d2   :  { %v1214_v37 = vmul.f32 0.2, %v2506_v36  ;;  %v1157_v38 = vpop.f32.mrb[57].mxu1 }
 0x2d3   :  { %v1212_v39 = vmul.f32 0.2, %v1157_v38  ;;  %v2507_v40 = vpop.f32.mrb[58].mxu1  ;;  %2536 = vmatprep.mubr.msk.bf16.mxu0 %vm417_vm2, %v1262_v35 }
 0x2d4   :  { %v1215_v41 = vmul.f32 0.2, %v2507_v40  ;;  %v1160_v42 = vpop.f32.mrb[59].mxu1  ;;  %2537 = vmatmul.mubr.msk.bf16.gmra.mrb[52].mxu0 %vm417_vm2, %v1263_v34  ;;  %v1246_v44 = vmax.f32 %v2506_v36, %v1214_v37 }
 0x2d5   :  { %v1213_v43 = vmul.f32 0.2, %v1160_v42  ;;  %v1244_v46 = vmax.f32 %v1157_v38, %v1212_v39 }
 0x2d6   :  { %v1247_v45 = vmax.f32 %v2507_v40, %v1215_v41 }
 0x2d7   :  { %v1245_v47 = vmax.f32 %v1160_v42, %v1213_v43 }
 0x2d8   :  { %v1265_v48 = vpack.c.bf16 %v1247_v45, %v1246_v44 }
 0x2d9   :  { %v1264_v49 = vpack.c.bf16 %v1245_v47, %v1244_v46  ;;  %v2510_v50 = vpop.f32.mrb[60].mxu1 }
 0x2da   :  { %v1218_v51 = vmul.f32 0.2, %v2510_v50  ;;  %v1173_v52 = vpop.f32.mrb[61].mxu1 }
 0x2db   :  { %v1216_v53 = vmul.f32 0.2, %v1173_v52  ;;  %v2511_v54 = vpop.f32.mrb[62].mxu1  ;;  %2540 = vmatprep.mubr.msk.bf16.mxu0 %vm417_vm2, %v1264_v49 }
 0x2dc   :  { %v1219_v55 = vmul.f32 0.2, %v2511_v54  ;;  %v1176_v9 = vpop.f32.mrb[63].mxu1  ;;  %2541 = vmatmul.mubr.msk.bf16.gmra.mrb[56].mxu0 %vm417_vm2, %v1265_v48  ;;  %v1250_v57 = vmax.f32 %v2510_v50, %v1218_v51 }
 0x2dd   :  { %v1217_v56 = vmul.f32 0.2, %v1176_v9  ;;  %v1248_v59 = vmax.f32 %v1173_v52, %v1216_v53 }
 0x2de   :  { %v1251_v58 = vmax.f32 %v2511_v54, %v1219_v55 }
 0x2df   :  { %v1249_v60 = vmax.f32 %v1176_v9, %v1217_v56 }
 0x2e0   :  { %v1267_v61 = vpack.c.bf16 %v1251_v58, %v1250_v57 }
 0x2e1   :  { %v1266_v62 = vpack.c.bf16 %v1249_v60, %v1248_v59 }
 0x2e3   :  { %2544 = vmatprep.mubr.msk.bf16.mxu0 %vm417_vm2, %v1266_v62 }
 0x2e4   :  { %2545 = vmatmul.mubr.msk.bf16.gmra.mrb[60].mxu0 %vm417_vm2, %v1267_v61 }
 0x37f   :  { %v2518_v63 = vpop.f32.mrb[32].mxu0 }
 0x380   :  { %v1495_v0 = vmul.f32 0.2, %v2518_v63  ;;  %v1366_v1 = vpop.f32.mrb[33].mxu0 }
 0x381   :  { %v1493_v2 = vmul.f32 0.2, %v1366_v1  ;;  %v2519_v3 = vpop.f32.mrb[34].mxu0 }
 0x382   :  { %v1496_v4 = vmul.f32 0.2, %v2519_v3  ;;  %v1369_v5 = vpop.f32.mrb[35].mxu0  ;;  %v1527_v7 = vmax.f32 %v2518_v63, %v1495_v0 }
 0x383   :  { %v1494_v6 = vmul.f32 0.2, %v1369_v5  ;;  %v1525_v10 = vmax.f32 %v1366_v1, %v1493_v2 }
 0x384   :  { %v1528_v8 = vmax.f32 %v2519_v3, %v1496_v4 }
 0x385   :  { %v1526_v11 = vmax.f32 %v1369_v5, %v1494_v6 }
 0x386   :  { %v1558_v12 = vpack.c.bf16 %v1528_v8, %v1527_v7 }
 0x387   :  { %v1557_v13 = vpack.c.bf16 %v1526_v11, %v1525_v10  ;;  %v2522_v14 = vpop.f32.mrb[36].mxu0 }
 0x388   :  { %v1499_v15 = vmul.f32 0.2, %v2522_v14  ;;  %v1382_v16 = vpop.f32.mrb[37].mxu0 }
 0x389   :  { %v1497_v17 = vmul.f32 0.2, %v1382_v16  ;;  %v2523_v18 = vpop.f32.mrb[38].mxu0  ;;  %2556 = vmatprep.mubr.msk.bf16.mxu0 %vm111_vm0, %v1557_v13 }
 0x38a   :  { %v1500_v19 = vmul.f32 0.2, %v2523_v18  ;;  %v1385_v20 = vpop.f32.mrb[39].mxu0  ;;  %2557 = vmatmul.mubr.msk.bf16.vlgmr.msra.gmra.mrb[64].mxu0 %vm111_vm0, %v1558_v12  ;;  %v1531_v22 = vmax.f32 %v2522_v14, %v1499_v15 }
 0x38b   :  { %v1498_v21 = vmul.f32 0.2, %v1385_v20  ;;  %v1529_v24 = vmax.f32 %v1382_v16, %v1497_v17 }
 0x38c   :  { %v1532_v23 = vmax.f32 %v2523_v18, %v1500_v19 }
 0x38d   :  { %v1530_v25 = vmax.f32 %v1385_v20, %v1498_v21 }
 0x38e   :  { %v1560_v26 = vpack.c.bf16 %v1532_v23, %v1531_v22 }
 0x38f   :  { %v1559_v27 = vpack.c.bf16 %v1530_v25, %v1529_v24  ;;  %v2526_v28 = vpop.f32.mrb[40].mxu0 }
 0x390   :  { %v1503_v29 = vmul.f32 0.2, %v2526_v28  ;;  %v1398_v30 = vpop.f32.mrb[41].mxu0 }
 0x391   :  { %v1501_v31 = vmul.f32 0.2, %v1398_v30  ;;  %v2527_v32 = vpop.f32.mrb[42].mxu0  ;;  %2560 = vmatprep.mubr.msk.bf16.mxu0 %vm111_vm0, %v1559_v27 }
 0x392   :  { %v1504_v33 = vmul.f32 0.2, %v2527_v32  ;;  %v1401_v34 = vpop.f32.mrb[43].mxu0  ;;  %2561 = vmatmul.mubr.msk.bf16.gmra.mrb[68].mxu0 %vm111_vm0, %v1560_v26  ;;  %v1535_v36 = vmax.f32 %v2526_v28, %v1503_v29 }
 0x393   :  { %v1502_v35 = vmul.f32 0.2, %v1401_v34  ;;  %v1533_v38 = vmax.f32 %v1398_v30, %v1501_v31 }
 0x394   :  { %v1536_v37 = vmax.f32 %v2527_v32, %v1504_v33 }
 0x395   :  { %v1534_v39 = vmax.f32 %v1401_v34, %v1502_v35 }
 0x396   :  { %v1562_v40 = vpack.c.bf16 %v1536_v37, %v1535_v36 }
 0x397   :  { %v1561_v41 = vpack.c.bf16 %v1534_v39, %v1533_v38  ;;  %v2530_v42 = vpop.f32.mrb[44].mxu0 }
 0x398   :  { %v1507_v43 = vmul.f32 0.2, %v2530_v42  ;;  %v1414_v44 = vpop.f32.mrb[45].mxu0 }
 0x399   :  { %v1505_v45 = vmul.f32 0.2, %v1414_v44  ;;  %v2531_v46 = vpop.f32.mrb[46].mxu0  ;;  %2564 = vmatprep.mubr.msk.bf16.mxu0 %vm111_vm0, %v1561_v41 }
 0x39a   :  { %v1508_v47 = vmul.f32 0.2, %v2531_v46  ;;  %v1417_v48 = vpop.f32.mrb[47].mxu0  ;;  %2565 = vmatmul.mubr.msk.bf16.gmra.mrb[72].mxu0 %vm111_vm0, %v1562_v40  ;;  %v1539_v50 = vmax.f32 %v2530_v42, %v1507_v43 }
 0x39b   :  { %v1506_v49 = vmul.f32 0.2, %v1417_v48  ;;  %v1537_v52 = vmax.f32 %v1414_v44, %v1505_v45 }
 0x39c   :  { %v1540_v51 = vmax.f32 %v2531_v46, %v1508_v47 }
 0x39d   :  { %v1538_v53 = vmax.f32 %v1417_v48, %v1506_v49 }
 0x39e   :  { %v1564_v54 = vpack.c.bf16 %v1540_v51, %v1539_v50 }
 0x39f   :  { %v1563_v55 = vpack.c.bf16 %v1538_v53, %v1537_v52  ;;  %v2534_v9 = vpop.f32.mrb[48].mxu0 }
 0x3a0   :  { %v1511_v56 = vmul.f32 0.2, %v2534_v9  ;;  %v1430_v57 = vpop.f32.mrb[49].mxu0 }
 0x3a1   :  { %v1509_v58 = vmul.f32 0.2, %v1430_v57  ;;  %v2535_v59 = vpop.f32.mrb[50].mxu0  ;;  %2568 = vmatprep.mubr.msk.bf16.mxu0 %vm111_vm0, %v1563_v55 }
 0x3a2   :  { %v1512_v60 = vmul.f32 0.2, %v2535_v59  ;;  %v1433_v61 = vpop.f32.mrb[51].mxu0  ;;  %2569 = vmatmul.mubr.msk.bf16.gmra.mrb[76].mxu0 %vm111_vm0, %v1564_v54  ;;  %v1543_v63 = vmax.f32 %v2534_v9, %v1511_v56 }
 0x3a3   :  { %v1510_v62 = vmul.f32 0.2, %v1433_v61  ;;  %v1541_v1 = vmax.f32 %v1430_v57, %v1509_v58 }
 0x3a4   :  { %v1544_v0 = vmax.f32 %v2535_v59, %v1512_v60 }
 0x3a5   :  { %v1542_v2 = vmax.f32 %v1433_v61, %v1510_v62 }
 0x3a6   :  { %v1566_v3 = vpack.c.bf16 %v1544_v0, %v1543_v63 }
 0x3a7   :  { %v1565_v4 = vpack.c.bf16 %v1542_v2, %v1541_v1  ;;  %v2538_v5 = vpop.f32.mrb[52].mxu0 }
 0x3a8   :  { %v1515_v6 = vmul.f32 0.2, %v2538_v5  ;;  %v1446_v7 = vpop.f32.mrb[53].mxu0 }
 0x3a9   :  { %v1513_v8 = vmul.f32 0.2, %v1446_v7  ;;  %v2539_v10 = vpop.f32.mrb[54].mxu0  ;;  %2572 = vmatprep.mubr.msk.bf16.mxu0 %vm111_vm0, %v1565_v4 }
 0x3aa   :  { %v1516_v11 = vmul.f32 0.2, %v2539_v10  ;;  %v1449_v12 = vpop.f32.mrb[55].mxu0  ;;  %2573 = vmatmul.mubr.msk.bf16.gmra.mrb[80].mxu0 %vm111_vm0, %v1566_v3  ;;  %v1547_v14 = vmax.f32 %v2538_v5, %v1515_v6 }
 0x3ab   :  { %v1514_v13 = vmul.f32 0.2, %v1449_v12  ;;  %v1545_v16 = vmax.f32 %v1446_v7, %v1513_v8 }
 0x3ac   :  { %v1548_v15 = vmax.f32 %v2539_v10, %v1516_v11 }
 0x3ad   :  { %v1546_v17 = vmax.f32 %v1449_v12, %v1514_v13 }
 0x3ae   :  { %v1568_v18 = vpack.c.bf16 %v1548_v15, %v1547_v14 }
 0x3af   :  { %v1567_v19 = vpack.c.bf16 %v1546_v17, %v1545_v16  ;;  %v2542_v20 = vpop.f32.mrb[56].mxu0 }
 0x3b0   :  { %v1519_v21 = vmul.f32 0.2, %v2542_v20  ;;  %v1462_v22 = vpop.f32.mrb[57].mxu0 }
 0x3b1   :  { %v1517_v23 = vmul.f32 0.2, %v1462_v22  ;;  %v2543_v24 = vpop.f32.mrb[58].mxu0  ;;  %2576 = vmatprep.mubr.msk.bf16.mxu0 %vm111_vm0, %v1567_v19 }
 0x3b2   :  { %v1520_v25 = vmul.f32 0.2, %v2543_v24  ;;  %v1465_v26 = vpop.f32.mrb[59].mxu0  ;;  %2577 = vmatmul.mubr.msk.bf16.gmra.mrb[84].mxu0 %vm111_vm0, %v1568_v18  ;;  %v1551_v28 = vmax.f32 %v2542_v20, %v1519_v21 }
 0x3b3   :  { %v1518_v27 = vmul.f32 0.2, %v1465_v26  ;;  %v1549_v30 = vmax.f32 %v1462_v22, %v1517_v23 }
 0x3b4   :  { %v1552_v29 = vmax.f32 %v2543_v24, %v1520_v25 }
 0x3b5   :  { %v1550_v31 = vmax.f32 %v1465_v26, %v1518_v27 }
 0x3b6   :  { %v1570_v32 = vpack.c.bf16 %v1552_v29, %v1551_v28 }
 0x3b7   :  { %v1569_v33 = vpack.c.bf16 %v1550_v31, %v1549_v30  ;;  %v2546_v34 = vpop.f32.mrb[60].mxu0 }
 0x3b8   :  { %v1523_v35 = vmul.f32 0.2, %v2546_v34  ;;  %v1478_v36 = vpop.f32.mrb[61].mxu0 }
 0x3b9   :  { %v1521_v37 = vmul.f32 0.2, %v1478_v36  ;;  %v2547_v38 = vpop.f32.mrb[62].mxu0  ;;  %2580 = vmatprep.mubr.msk.bf16.mxu0 %vm111_vm0, %v1569_v33 }
 0x3ba   :  { %v1524_v39 = vmul.f32 0.2, %v2547_v38  ;;  %v1481_v40 = vpop.f32.mrb[63].mxu0  ;;  %2581 = vmatmul.mubr.msk.bf16.gmra.mrb[88].mxu0 %vm111_vm0, %v1570_v32  ;;  %v1555_v42 = vmax.f32 %v2546_v34, %v1523_v35 }
 0x3bb   :  { %v1522_v41 = vmul.f32 0.2, %v1481_v40  ;;  %v1553_v44 = vmax.f32 %v1478_v36, %v1521_v37 }
 0x3bc   :  { %v1556_v43 = vmax.f32 %v2547_v38, %v1524_v39 }
 0x3bd   :  { %v1554_v45 = vmax.f32 %v1481_v40, %v1522_v41 }
 0x3be   :  { %v1572_v46 = vpack.c.bf16 %v1556_v43, %v1555_v42 }
 0x3bf   :  { %v1571_v47 = vpack.c.bf16 %v1554_v45, %v1553_v44 }
 0x3c1   :  { %2584 = vmatprep.mubr.msk.bf16.mxu0 %vm111_vm0, %v1571_v47 }
 0x3c2   :  { %2585 = vmatmul.mubr.msk.bf16.gmra.mrb[92].mxu0 %vm111_vm0, %v1572_v46 }
 0x45d   :  { %v2558_v48 = vpop.f32.mrb[64].mxu0 }
 0x45e   :  { %v1687_v49 = vpop.f32.mrb[65].mxu0 }
 0x45f   :  { %v2559_v50 = vpop.f32.mrb[66].mxu0 }
 0x460   :  { %v2171_v51 = vpack.c.bf16 %v2559_v50, %v2558_v48  ;;  %v1690_v52 = vpop.f32.mrb[67].mxu0 }
 0x461   :  { %v2166_v53 = vpack.c.bf16 %v1690_v52, %v1687_v49 }
 0x462   :  { %2243 = vst [vmem:[#allocation2 + $0x8] sm:$0xff] %v2171_v51  }
 0x463   :  { %2167 = vst [vmem:[#allocation2] sm:$0xff] %v2166_v53  }
 0x465   :  { %v2562_v54 = vpop.f32.mrb[68].mxu0 }
 0x466   :  { %v1703_v55 = vpop.f32.mrb[69].mxu0 }
 0x467   :  { %v2563_v9 = vpop.f32.mrb[70].mxu0 }
 0x468   :  { %v2181_v56 = vpack.c.bf16 %v2563_v9, %v2562_v54  ;;  %v1706_v57 = vpop.f32.mrb[71].mxu0 }
 0x469   :  { %v2176_v58 = vpack.c.bf16 %v1706_v57, %v1703_v55 }
 0x46a   :  { %2245 = vst [vmem:[#allocation2 + $0x18] sm:$0xff] %v2181_v56  }
 0x46b   :  { %2244 = vst [vmem:[#allocation2 + $0x10] sm:$0xff] %v2176_v58  }
 0x46d   :  { %v2566_v59 = vpop.f32.mrb[72].mxu0 }
 0x46e   :  { %v1719_v60 = vpop.f32.mrb[73].mxu0 }
 0x46f   :  { %v2567_v61 = vpop.f32.mrb[74].mxu0 }
 0x470   :  { %v2191_v62 = vpack.c.bf16 %v2567_v61, %v2566_v59  ;;  %v1722_v63 = vpop.f32.mrb[75].mxu0 }
 0x471   :  { %v2186_v0 = vpack.c.bf16 %v1722_v63, %v1719_v60 }
 0x472   :  { %2247 = vst [vmem:[#allocation2 + $0x28] sm:$0xff] %v2191_v62  }
 0x473   :  { %2246 = vst [vmem:[#allocation2 + $0x20] sm:$0xff] %v2186_v0  }
 0x475   :  { %v2570_v1 = vpop.f32.mrb[76].mxu0 }
 0x476   :  { %v1735_v2 = vpop.f32.mrb[77].mxu0 }
 0x477   :  { %v2571_v3 = vpop.f32.mrb[78].mxu0 }
 0x478   :  { %v2201_v4 = vpack.c.bf16 %v2571_v3, %v2570_v1  ;;  %v1738_v5 = vpop.f32.mrb[79].mxu0 }
 0x479   :  { %v2196_v6 = vpack.c.bf16 %v1738_v5, %v1735_v2 }
 0x47a   :  { %2249 = vst [vmem:[#allocation2 + $0x38] sm:$0xff] %v2201_v4  }
 0x47b   :  { %2248 = vst [vmem:[#allocation2 + $0x30] sm:$0xff] %v2196_v6  }
 0x47d   :  { %v2574_v7 = vpop.f32.mrb[80].mxu0 }
 0x47e   :  { %v1751_v8 = vpop.f32.mrb[81].mxu0 }
 0x47f   :  { %v2575_v10 = vpop.f32.mrb[82].mxu0 }
 0x480   :  { %v2211_v11 = vpack.c.bf16 %v2575_v10, %v2574_v7  ;;  %v1754_v12 = vpop.f32.mrb[83].mxu0 }
 0x481   :  { %v2206_v13 = vpack.c.bf16 %v1754_v12, %v1751_v8 }
 0x482   :  { %2251 = vst [vmem:[#allocation2 + $0x48] sm:$0xff] %v2211_v11  }
 0x483   :  { %2250 = vst [vmem:[#allocation2 + $0x40] sm:$0xff] %v2206_v13  }
 0x485   :  { %v2578_v14 = vpop.f32.mrb[84].mxu0 }
 0x486   :  { %v1767_v15 = vpop.f32.mrb[85].mxu0 }
 0x487   :  { %v2579_v16 = vpop.f32.mrb[86].mxu0 }
 0x488   :  { %v2221_v17 = vpack.c.bf16 %v2579_v16, %v2578_v14  ;;  %v1770_v18 = vpop.f32.mrb[87].mxu0 }
 0x489   :  { %v2216_v19 = vpack.c.bf16 %v1770_v18, %v1767_v15 }
 0x48a   :  { %2253 = vst [vmem:[#allocation2 + $0x58] sm:$0xff] %v2221_v17  }
 0x48b   :  { %2252 = vst [vmem:[#allocation2 + $0x50] sm:$0xff] %v2216_v19  }
 0x48d   :  { %v2582_v20 = vpop.f32.mrb[88].mxu0 }
 0x48e   :  { %v1783_v21 = vpop.f32.mrb[89].mxu0 }
 0x48f   :  { %v2583_v22 = vpop.f32.mrb[90].mxu0 }
 0x490   :  { %v2231_v23 = vpack.c.bf16 %v2583_v22, %v2582_v20  ;;  %v1786_v24 = vpop.f32.mrb[91].mxu0 }
 0x491   :  { %v2226_v25 = vpack.c.bf16 %v1786_v24, %v1783_v21 }
 0x492   :  { %2255 = vst [vmem:[#allocation2 + $0x68] sm:$0xff] %v2231_v23  }
 0x493   :  { %2254 = vst [vmem:[#allocation2 + $0x60] sm:$0xff] %v2226_v25  }
 0x495   :  { %v2586_v26 = vpop.f32.mrb[92].mxu0 }
 0x496   :  { %v1799_v27 = vpop.f32.mrb[93].mxu0 }
 0x497   :  { %v2587_v28 = vpop.f32.mrb[94].mxu0 }
 0x498   :  { %v2241_v29 = vpack.c.bf16 %v2587_v28, %v2586_v26  ;;  %v1802_v30 = vpop.f32.mrb[95].mxu0 }
 0x499   :  { %v2236_v31 = vpack.c.bf16 %v1802_v30, %v1799_v27 }
 0x49a   :  { %2257 = vst [vmem:[#allocation2 + $0x78] sm:$0xff] %v2241_v29  }
 0x49b   :  { %2256 = vst [vmem:[#allocation2 + $0x70] sm:$0xff] %v2236_v31  }
 0x49c   :  { %1978 = vsyncadd [#allocation3], 448  ;;  %s2661_s7 = smov [#allocation2]  }
 0x49d   :  { %s1979_s9 = sshll.u32 %s2661_s7, 4  ;;  %s1980_s9 = int_to_ptr.vmem [resolvable:$true] %s1979_s9 }
 0x49e   :  { %s2637_s10 = scalar_lea.vmem %s1980_s9, 1600  ;;  %s2641_s11 = scalar_lea.vmem %s1980_s9, 2048 }
 0x49f   :  { %p2638_p0 = scmp.ne.s32.totalorder %s1980_s9, %s2637_s10  ;;  %p2642_p1 = scmp.lt.s32.totalorder %s1980_s9, %s1980_s9 }
 0x4a0   :  { %p2643_p2 = scmp.lt.s32.totalorder %s2641_s11, %s2637_s10 }
 0x4a2   :  { %p2644_p3 = por %p2643_p2, %p2642_p1 }
 0x4a4   :  { %p2645_p4 = pnand %p2644_p3, %p2638_p0 }
 0x4a6   :  { %2648 = shalt.err (!%p2645_p4)
}
 0x4a7   :  { %s2649_s0 = scalar_lea.hbm %s3063_s8, 1600 }
 0x4a8   :  { %p2650_p5 = scmp.ne.s32.totalorder %s3063_s8, %s2649_s0  ;;  %p2653_p6 = scmp.lt.u32.totalorder %s2649_s0, %s3063_s8 }
 0x4aa   :  { %p2655_p7 = pnand %p2653_p6, %p2650_p5 }
 0x4ac   :  { %2658 = shalt.err (!%p2655_p7)
}
 0x4ad   :  { %s2662_s15 = smov 64   ;;  %s2663_s16 = smov 4  }
 0x4ae   :  { %1985 = dma.vmem_to_hbm [thread:$0]  %s1980_s9, 1600, %s3063_s8, [#allocation3], %s2662_s15, %s2662_s15, %s2663_s16  }
 0x4af   :  { %2659 = dma.done.wait [#allocation3], 2048  }
 0x4b0   :  { %2660 = vsyncadd [#allocation3], 4294965248 }
 0x4b1   :  { %1989 = vsyncpa [#allocation3], 1 }

</bundles_post_ra>
